<compile_context>
chip_gen: v7x
topology: tpu7x:2x2x1
jax: 0.10.0
libtpu: 0.0.40
codegen_flags: <defaults>
</compile_context>

<pallas_src>
import functools

import jax
import jax.numpy as jnp
from jax.experimental import pallas as pl
from jax.experimental.pallas import tpu as pltpu


def _soft_target_ce_kernel(x_ref, t_ref, o_ref, *, tm, n_rows, mask_rows):
    x = x_ref[...].astype(jnp.float32)   # (tm, C)
    t = t_ref[...].astype(jnp.float32)   # (tm, C)

    # log_softmax(x) = x_shift - lse, with the lse subtraction folded into the
    # row reduction below (never materialized as a (tm, C) array).
    x_max = jnp.max(x, axis=-1, keepdims=True)
    x_shift = x - x_max
    lse = jnp.log(jnp.sum(jnp.exp(x_shift), axis=-1, keepdims=True))  # (tm, 1)

    # softmax(target) normalization applied AFTER the row reduction:
    t_max = jnp.max(t, axis=-1, keepdims=True)
    t_exp = jnp.exp(t - t_max)                                        # (tm, C)
    t_sum = jnp.sum(t_exp, axis=-1, keepdims=True)                    # (tm, 1)

    # sum(t_exp * (x_shift - lse)) == sum(t_exp * x_shift) - lse * t_sum
    wsum = jnp.sum(t_exp * x_shift, axis=-1, keepdims=True) - lse * t_sum
    loss_rows = -wsum / t_sum                                         # (tm, 1)

    if mask_rows:
        # Ragged tail: the last block reads past N; garbage rows (possibly
        # Inf/NaN after exp) are selected away BEFORE the partial sum.
        i = pl.program_id(0)
        row_ids = i * tm + jax.lax.broadcasted_iota(jnp.int32, (tm, 1), 0)
        loss_rows = jnp.where(row_ids < n_rows, loss_rows, jnp.float32(0.0))

    # One partial sum per grid step -> the grid axis can be 'parallel'.
    o_ref[...] = jnp.sum(loss_rows).reshape(1, 1, 1)


def soft_target_cross_entropy_v2(x, target, *, tm=None, vmem_limit_bytes=None):
    """x, target: [N, C]. Returns the scalar mean soft-target cross entropy (f32)."""
    assert x.shape == target.shape and x.ndim == 2
    N, C = x.shape
    x_bytes = jnp.dtype(x.dtype).itemsize
    t_bytes = jnp.dtype(target.dtype).itemsize

    # Generation-aware VMEM sizing: scoped limit ~ half of physical per-core
    # VMEM (capped at 64 MiB), tiling budget ~65% of that (headroom for
    # double-buffered inputs + compiler temps).  Fallback 64 MiB is v7x-safe.
    if vmem_limit_bytes is None:
        try:
            cap = int(getattr(pltpu.get_tpu_info(), "vmem_capacity_bytes", 0)) or (64 << 20)
        except Exception:
            cap = 64 << 20
        vmem_limit_bytes = min(cap // 2, 64 << 20)
    vmem_limit_bytes = int(vmem_limit_bytes)
    budget = int(vmem_limit_bytes * 0.65)

    # Sublane alignment: 8 rows for 32-bit inputs, 16 for 16-bit inputs.
    align = 16 if min(x_bytes, t_bytes) == 2 else 8

    if tm is None:
        # Per-row VMEM cost ~ double-buffered native-dtype inputs + ~6 f32
        # (tm, C) intermediates materialized by the kernel body.
        per_row = C * (2 * (x_bytes + t_bytes) + 6 * 4)
        # Target ~4 MiB per input tile so per-grid-step overhead amortizes.
        tile_rows = (4 << 20) // max(C * max(x_bytes, t_bytes), 1)
        tm = min(budget // max(per_row, 1), tile_rows, 4096)
    tm = min(int(tm), pl.cdiv(N, align) * align)
    tm = max(align, (tm // align) * align)

    grid_n = pl.cdiv(N, tm)
    # No padding: whenever tm does not divide N, mask the ragged tail in-kernel.
    mask_rows = (grid_n * tm != N)

    kernel = functools.partial(
        _soft_target_ce_kernel, tm=tm, n_rows=N, mask_rows=mask_rows
    )

    partials = pl.pallas_call(
        kernel,
        out_shape=jax.ShapeDtypeStruct((grid_n, 1, 1), jnp.float32),
        grid_spec=pltpu.PrefetchScalarGridSpec(
            num_scalar_prefetch=0,
            grid=(grid_n,),
            in_specs=[
                pl.BlockSpec((tm, C), lambda i: (i, 0)),
                pl.BlockSpec((tm, C), lambda i: (i, 0)),
            ],
            out_specs=pl.BlockSpec((1, 1, 1), lambda i: (i, 0, 0)),
        ),
        compiler_params=pltpu.CompilerParams(
            dimension_semantics=("parallel",),
            vmem_limit_bytes=vmem_limit_bytes,
        ),
    )(x, target)

    # Final reduction over per-tile partials in f32 (XLA, outside the kernel).
    return jnp.sum(partials) / jnp.float32(N)


if __name__ == "__main__":
    key = jax.random.PRNGKey(0)
    kx, kt = jax.random.split(key)

    def ref_loss(xx, tt):
        return jnp.mean(
            jnp.sum(-jax.nn.softmax(tt, axis=-1) * jax.nn.log_softmax(xx, axis=-1),
                    axis=-1)
        )

    # 1) Small, tile-aligned case.
    N, C = 16, 128
    x = jax.random.normal(kx, (N, C), dtype=jnp.float32)
    target = jax.random.normal(kt, (N, C), dtype=jnp.float32)
    loss = jax.block_until_ready(soft_target_cross_entropy_v2(x, target))
    ref = ref_loss(x, target)
    assert jnp.allclose(loss, ref, rtol=1e-5, atol=1e-5), (loss, ref)

    # 2) Ragged N with a forced small tile: multi-block, masked tail, no pad.
    N2 = 20
    x2 = jax.random.normal(kx, (N2, C), dtype=jnp.float32)
    t2 = jax.random.normal(kt, (N2, C), dtype=jnp.float32)
    loss2 = jax.block_until_ready(soft_target_cross_entropy_v2(x2, t2, tm=16))
    ref2 = ref_loss(x2, t2)
    assert jnp.allclose(loss2, ref2, rtol=1e-5, atol=1e-5), (loss2, ref2)

    # 3) Ragged N with the default (large) tile: single overhanging block, masked.
    N3 = 36
    x3 = jax.random.normal(kx, (N3, C), dtype=jnp.float32)
    t3 = jax.random.normal(kt, (N3, C), dtype=jnp.float32)
    loss3 = jax.block_until_ready(soft_target_cross_entropy_v2(x3, t3))
    ref3 = ref_loss(x3, t3)
    assert jnp.allclose(loss3, ref3, rtol=1e-5, atol=1e-5), (loss3, ref3)

    print("KERNEL_OK")
</pallas_src>

<mosaic_0001>
module attributes {stable_mosaic.version = 11 : i64} {
  func.func @_soft_target_ce_kernel(%arg0: i32, %arg1: memref<16x128xf32, #tpu.memory_space<vmem>>, %arg2: memref<16x128xf32, #tpu.memory_space<vmem>>, %arg3: memref<1x1x1xf32, #tpu.memory_space<vmem>>) attributes {dimension_semantics = [#tpu.dimension_semantics<parallel>], iteration_bounds = array<i64: 1>, scalar_prefetch = 0 : i64, scratch_operands = 0 : i64, tpu.core_type = #tpu.core_type<tc>, window_params = [{transform_indices = @transform_0, window_bounds = array<i64: 16, 128>}, {transform_indices = @transform_1, window_bounds = array<i64: 16, 128>}, {transform_indices = @transform_2, window_bounds = array<i64: 1, 1, 1>}]} {
    %c0 = arith.constant 0 : index
    %c0_0 = arith.constant 0 : index
    %0 = vector.load %arg1[%c0, %c0_0] : memref<16x128xf32, #tpu.memory_space<vmem>>, vector<16x128xf32>
    %c0_1 = arith.constant 0 : index
    %c0_2 = arith.constant 0 : index
    %1 = vector.load %arg2[%c0_1, %c0_2] : memref<16x128xf32, #tpu.memory_space<vmem>>, vector<16x128xf32>
    %cst = arith.constant dense<0xFF800000> : vector<16xf32>
    %2 = vector.multi_reduction <maximumf>, %0, %cst [1] : vector<16x128xf32> to vector<16xf32>
    %3 = vector.shape_cast %2 : vector<16xf32> to vector<16x1xf32>
    %4 = vector.broadcast %3 : vector<16x1xf32> to vector<16x128xf32>
    %5 = arith.subf %0, %4 : vector<16x128xf32>
    %6 = math.exp %5 : vector<16x128xf32>
    %cst_3 = arith.constant dense<0.000000e+00> : vector<16xf32>
    %7 = vector.multi_reduction <add>, %6, %cst_3 [1] : vector<16x128xf32> to vector<16xf32>
    %8 = vector.shape_cast %7 : vector<16xf32> to vector<16x1xf32>
    %9 = math.log %8 : vector<16x1xf32>
    %cst_4 = arith.constant dense<0xFF800000> : vector<16xf32>
    %10 = vector.multi_reduction <maximumf>, %1, %cst_4 [1] : vector<16x128xf32> to vector<16xf32>
    %11 = vector.shape_cast %10 : vector<16xf32> to vector<16x1xf32>
    %12 = vector.broadcast %11 : vector<16x1xf32> to vector<16x128xf32>
    %13 = arith.subf %1, %12 : vector<16x128xf32>
    %14 = math.exp %13 : vector<16x128xf32>
    %cst_5 = arith.constant dense<0.000000e+00> : vector<16xf32>
    %15 = vector.multi_reduction <add>, %14, %cst_5 [1] : vector<16x128xf32> to vector<16xf32>
    %16 = vector.shape_cast %15 : vector<16xf32> to vector<16x1xf32>
    %17 = arith.mulf %14, %5 : vector<16x128xf32>
    %cst_6 = arith.constant dense<0.000000e+00> : vector<16xf32>
    %18 = vector.multi_reduction <add>, %17, %cst_6 [1] : vector<16x128xf32> to vector<16xf32>
    %19 = vector.shape_cast %18 : vector<16xf32> to vector<16x1xf32>
    %20 = arith.mulf %9, %16 : vector<16x1xf32>
    %21 = arith.subf %19, %20 : vector<16x1xf32>
    %cst_7 = arith.constant 0.000000e+00 : f32
    %22 = vector.broadcast %cst_7 : f32 to vector<16x1xf32>
    %23 = arith.subf %22, %21 : vector<16x1xf32>
    %24 = arith.divf %23, %16 : vector<16x1xf32>
    %25 = vector.shape_cast %24 : vector<16x1xf32> to vector<1x16x1xf32>
    %cst_8 = arith.constant dense<0.000000e+00> : vector<1xf32>
    %26 = vector.multi_reduction <add>, %25, %cst_8 [1, 2] : vector<1x16x1xf32> to vector<1xf32>
    %27 = vector.shape_cast %26 : vector<1xf32> to vector<1x1x1xf32>
    %28 = vector.extract %27[0, 0, 0] : f32 from vector<1x1x1xf32>
    %29 = vector.broadcast %28 : f32 to vector<1x1x1xf32>
    %c0_9 = arith.constant 0 : index
    %c0_10 = arith.constant 0 : index
    %c0_11 = arith.constant 0 : index
    %30 = vector.load %arg3[%c0_9, %c0_10, %c0_11] : memref<1x1x1xf32, #tpu.memory_space<vmem>>, vector<1x1x1xf32>
    tpu.vector_store %arg3[%c0_9, %c0_10, %c0_11], %29 {strides = array<i32>} : memref<1x1x1xf32, #tpu.memory_space<vmem>>, vector<1x1x1xf32>,
    return
  }
  func.func @transform_0(%arg0: i32) -> (i32, i32) {
    %c0_i32 = arith.constant 0 : i32
    %c0_i32_0 = arith.constant 0 : i32
    return %arg0, %c0_i32 : i32, i32
  }
  func.func @transform_1(%arg0: i32) -> (i32, i32) {
    %c0_i32 = arith.constant 0 : i32
    %c0_i32_0 = arith.constant 0 : i32
    return %arg0, %c0_i32 : i32, i32
  }
  func.func @transform_2(%arg0: i32) -> (i32, i32, i32) {
    %c0_i32 = arith.constant 0 : i32
    %c0_i32_0 = arith.constant 0 : i32
    %c0_i32_1 = arith.constant 0 : i32
    return %arg0, %c0_i32, %c0_i32_0 : i32, i32, i32
  }
}

</mosaic_0001>

<bundles_post_ra>
// kernel: tpu_custom_call.1
= control target key start
LH: loop header
LB: loop body
LE: loop exit
PB: predicated region body
PF: predicated region fallthrough
CT: control target
= control target key end

     0   :  { %7 = vsyncpa [#allocation3], 0  ;;  %s275_s0 = inlined_call_operand.hbm [shape: f32[16,128], index: 0, kind: input, shape index: {}]   ;;  %s276_s1 = inlined_call_operand.hbm [shape: f32[16,128], index: 1, kind: input, shape index: {}]   ;;  %s277_s2 = inlined_call_operand.hbm [shape: f32[1,1,1], index: 2, kind: output, shape index: {}]  }
   0x1   :  { %8 = vsyncpa [#allocation6], 0 }
   0x2   :  { %9 = vsyncpa [#allocation4], 0  ;;  %s219_s9 = smov [#allocation2]   ;;  %s147_s13 = scalar_lea.hbm %s275_s0, 256 }
   0x3   :  { %s15_s10 = sshll.u32 %s219_s9, 4  ;;  %p148_p0 = scmp.ne.s32.totalorder %s275_s0, %s147_s13  ;;  %s16_s10 = int_to_ptr.vmem [resolvable:$true] %s15_s10 }
   0x4   :  { %p151_p1 = scmp.lt.u32.totalorder %s147_s13, %s275_s0 }
   0x6   :  { %p153_p2 = pnand %p151_p1, %p148_p0 }
   0x8   :  { %156 = shalt.err (!%p153_p2)
}
   0x9   :  { %s157_s18 = scalar_lea.vmem %s16_s10, 256  ;;  %p162_p4 = scmp.lt.s32.totalorder %s16_s10, %s16_s10 }
   0xa   :  { %p158_p3 = scmp.ne.s32.totalorder %s16_s10, %s157_s18  ;;  %p163_p5 = scmp.lt.s32.totalorder %s157_s18, %s157_s18 }
   0xc   :  { %p164_p6 = por %p163_p5, %p162_p4 }
   0xe   :  { %p165_p7 = pnand %p164_p6, %p158_p3 }
  0x10   :  { %168 = shalt.err (!%p165_p7)
}
  0x11   :  { %s220_s19 = smov 128   ;;  %s221_s20 = smov 8  }
  0x12   :  { %21 = dma.hbm_to_vmem [thread:$0]  %s275_s0, 256, %s16_s10, [#allocation3], %s220_s19, %s220_s19, %s221_s20  }
  0x13   :  { %s222_s23 = smov [#allocation5]   ;;  %s169_s27 = scalar_lea.hbm %s276_s1, 256 }
  0x14   :  { %s27_s24 = sshll.u32 %s222_s23, 4  ;;  %p170_p8 = scmp.ne.s32.totalorder %s276_s1, %s169_s27  ;;  %s28_s24 = int_to_ptr.vmem [resolvable:$true] %s27_s24 }
  0x15   :  { %p173_p9 = scmp.lt.u32.totalorder %s169_s27, %s276_s1 }
  0x17   :  { %p175_p10 = pnand %p173_p9, %p170_p8 }
  0x19   :  { %178 = shalt.err (!%p175_p10)
}
  0x1a   :  { %s179_s4 = scalar_lea.vmem %s28_s24, 256  ;;  %p184_p12 = scmp.lt.s32.totalorder %s28_s24, %s28_s24 }
  0x1b   :  { %p180_p11 = scmp.ne.s32.totalorder %s28_s24, %s179_s4  ;;  %p185_p13 = scmp.lt.s32.totalorder %s179_s4, %s179_s4 }
  0x1d   :  { %p186_p0 = por %p185_p13, %p184_p12 }
  0x1f   :  { %p187_p1 = pnand %p186_p0, %p180_p11 }
  0x21   :  { %190 = shalt.err (!%p187_p1)
}
  0x22   :  { %33 = dma.hbm_to_vmem [thread:$0]  %s276_s1, 256, %s28_s24, [#allocation6], %s220_s19, %s220_s19, %s221_s20  }
  0x23   :  { %213 = dma.done.wait [#allocation3], 256  }
  0x24   :  { %214 = vsyncadd [#allocation3], 4294967040 }
  0x25   :  { %215 = dma.done.wait [#allocation6], 256  }
  0x26   :  { %216 = vsyncadd [#allocation6], 4294967040  ;;  %v42_v0 = vld [vmem:[#allocation5] sm:$0xff]  ;;  %v40_v1 = vld [vmem:[#allocation2] sm:$0xff]  ;;  %vm92_vm0 = vcmask 7168   ;;  %s223_s1 = smov [#allocation7]  }
  0x27   :  { %62 = vmax.xlane.f32.xlu1 %v42_v0  ;;  %44 = vmax.xlane.f32.xlu0 %v40_v1  ;;  %v43_v2 = vld [vmem:[#allocation5 + $0x8] sm:$0xff]  ;;  %v41_v3 = vld [vmem:[#allocation2 + $0x8] sm:$0xff]  ;;  %s114_s6 = sshll.u32 %s223_s1, 4  ;;  %vm106_vm1 = vcmask 0   ;;  %s115_s6 = int_to_ptr.vmem [resolvable:$true] %s114_s6 }
  0x28   :  { %s191_s8 = scalar_lea.vmem %s115_s6, 16  ;;  %s195_s9 = scalar_lea.vmem %s115_s6, 32 }
  0x29   :  { %p192_p2 = scmp.ne.s32.totalorder %s115_s6, %s191_s8  ;;  %p196_p3 = scmp.lt.s32.totalorder %s115_s6, %s115_s6 }
  0x2a   :  { %p197_p4 = scmp.lt.s32.totalorder %s195_s9, %s191_s8 }
  0x2b   :  { %64 = vmax.xlane.f32.xlu1 %v43_v2  ;;  %46 = vmax.xlane.f32.xlu0 %v41_v3 }
  0x2c   :  { %p198_p5 = por %p197_p4, %p196_p3 }
  0x2e   :  { %p199_p6 = pnand %p198_p5, %p192_p2 }
  0xb4   :  { %v63_v4 = vpop.xlane.xlu1 %62  ;;  %v45_v5 = vpop.xlane.xlu0 %44 }
  0xb5   :  { %v66_v6 = vsub.f32 %v42_v0, %v63_v4  ;;  %v48_v7 = vsub.f32 %v40_v1, %v45_v5 }
  0xb7   :  { %v50_v8 = vmul.f32 1.442695, %v48_v7  ;;  %v68_v11 = vmul.f32 1.442695, %v66_v6 }
  0xb8   :  { %v65_v9 = vpop.xlane.xlu1 %64  ;;  %v47_v10 = vpop.xlane.xlu0 %46 }
  0xb9   :  { %v49_v12 = vsub.f32 %v41_v3, %v47_v10  ;;  %131 = vpow2.f32 %v50_v8  ;;  %v67_v13 = vsub.f32 %v43_v2, %v65_v9 }
  0xba   :  { %133 = vpow2.f32 %v68_v11 }
  0xbb   :  { %v52_v14 = vmul.f32 1.442695, %v49_v12  ;;  %v70_v15 = vmul.f32 1.442695, %v67_v13 }
  0xbd   :  { %135 = vpow2.f32 %v52_v14 }
  0xbe   :  { %137 = vpow2.f32 %v70_v15 }
  0xc3   :  { %v132_v16 = vpop.eup %131 }
  0xc4   :  { %54 = vadd.xlane.f32.xlu0 %v132_v16  ;;  %v134_v17 = vpop.eup %133 }
  0xc5   :  { %v76_v19 = vmul.f32 %v134_v17, %v48_v7 }
  0xc7   :  { %v136_v18 = vpop.eup %135 }
  0xc8   :  { %72 = vadd.xlane.f32.xlu0 %v134_v17  ;;  %56 = vadd.xlane.f32.xlu1 %v136_v18  ;;  %v138_v20 = vpop.eup %137 }
  0xc9   :  { %v77_v21 = vmul.f32 %v138_v20, %v49_v12 }
  0xcc   :  { %78 = vadd.xlane.f32.xlu0 %v76_v19  ;;  %74 = vadd.xlane.f32.xlu1 %v138_v20 }
  0xd0   :  { %80 = vadd.xlane.f32.xlu1 %v77_v21 }
 0x151   :  { %v55_v22 = vpop.xlane.xlu0 %54 }
 0x152   :  { %139 = vlog2.f32 %v55_v22 }
 0x155   :  { %v57_v23 = vpop.xlane.xlu1 %56  ;;  %v73_v24 = vpop.xlane.xlu0 %72 }
 0x156   :  { %141 = vlog2.f32 %v57_v23 }
 0x157   :  { %143 = vrcp.f32 %v73_v24 }
 0x159   :  { %v75_v25 = vpop.xlane.xlu1 %74  ;;  %v79_v30 = vpop.xlane.xlu0 %78 }
 0x15a   :  { %145 = vrcp.f32 %v75_v25 }
 0x15c   :  { %v140_v26 = vpop.eup %139 }
 0x15d   :  { %v59_v27 = vmul.f32 0.6931472, %v140_v26  ;;  %v81_v36 = vpop.xlane.xlu1 %80 }
 0x15f   :  { %v82_v28 = vmul.f32 %v73_v24, %v59_v27 }
 0x160   :  { %v142_v29 = vpop.eup %141 }
 0x161   :  { %v61_v31 = vmul.f32 0.6931472, %v142_v29  ;;  %v84_v32 = vsub.f32 %v79_v30, %v82_v28  ;;  %v144_v35 = vpop.eup %143 }
 0x163   :  { %v83_v33 = vmul.f32 %v75_v25, %v61_v31  ;;  %v86_v34 = vsub.f32 0.0, %v84_v32 }
 0x164   :  { %v146_v38 = vpop.eup %145 }
 0x165   :  { %v85_v37 = vsub.f32 %v81_v36, %v83_v33  ;;  %v89_v39 = vmul.f32 %v144_v35, %v86_v34 }
 0x167   :  { %v87_v40 = vsub.f32 0.0, %v85_v37  ;;  %v93_v42 = vsel %vm92_vm0, %v89_v39, 0.0 }
 0x169   :  { %v91_v41 = vmul.f32 %v146_v38, %v87_v40 }
 0x16b   :  { %v94_v43 = vsel %vm92_vm0, %v91_v41, 0.0 }
 0x16c   :  { %v95_v44 = vadd.f32 %v94_v43, %v93_v42 }
 0x16e   :  { %96 = vadd.xlane.f32.xlu0 %v95_v44 }
 0x1fb   :  { %v97_v45 = vpop.xlane.xlu0 %96 }
 0x1fc   :  { %v98_v46 = vrot.slane %v97_v45, 4 }
 0x1fe   :  { %v99_v47 = vadd.f32 %v98_v46, %v97_v45 }
 0x200   :  { %v100_v48 = vrot.slane %v99_v47, 2 }
 0x202   :  { %v101_v49 = vadd.f32 %v100_v48, %v99_v47 }
 0x204   :  { %v102_v50 = vrot.slane %v101_v49, 1 }
 0x206   :  { %v103_v51 = vadd.f32 %v102_v50, %v101_v49 }
 0x208   :  { %124 = vpush %v103_v51 }
 0x239   :  { %s125_s7 = spop %124 }
 0x23a   :  { %v105_v52 = vstv %s125_s7 }
 0x23b   :  { %107 = vst.msk [vmem:[#allocation7] sm:$0x1] %vm106_vm1, %v105_v52 }
 0x23c   :  { %202 = shalt.err (!%p199_p6)
}
 0x23d   :  { %s203_s12 = scalar_lea.hbm %s277_s2, 16 }
 0x23e   :  { %p204_p7 = scmp.ne.s32.totalorder %s277_s2, %s203_s12  ;;  %p207_p8 = scmp.lt.u32.totalorder %s203_s12, %s277_s2 }
 0x240   :  { %p209_p9 = pnand %p207_p8, %p204_p7 }
 0x242   :  { %212 = shalt.err (!%p209_p9)
}
 0x243   :  { %117 = dma.vmem_to_hbm [thread:$0]  %s115_s6, 16, %s277_s2, [#allocation4]  }
 0x244   :  { %217 = dma.done.wait [#allocation4], 16  }
 0x245   :  { %218 = vsyncadd [#allocation4], 4294967280 }
 0x246   :  { %121 = vsyncpa [#allocation3], 1 }
 0x247   :  { %122 = vsyncpa [#allocation6], 1 }
 0x248   :  { %123 = vsyncpa [#allocation4], 1 }

</bundles_post_ra>
